<compile_context>
chip_gen: v5e
topology: v5e:2x2
jax: 0.10.0
libtpu: 0.0.40
codegen_flags: <defaults>
</compile_context>

<pallas_src>
import functools

import jax
import jax.numpy as jnp
from jax.experimental import pallas as pl
from jax.experimental.pallas import tpu as pltpu

TAU = 2.0
V_THRESHOLD = 1.0
V_RESET = 0.0


def _round_up(x, m):
    return ((x + m - 1) // m) * m


def _pick_tiles(n_in, n_out, tk, tn):
    """Lane-dense (multiple-of-128) tiles clipped to the padded problem size.

    tn is additionally capped at half the padded n_out (when possible) so the
    "parallel" j axis has >= 2 tiles and shards across both TensorCores (v7x).
    """
    kp128 = _round_up(n_in, 128)
    np128 = _round_up(n_out, 128)
    tk = min(tk, kp128)
    tn = min(tn, np128)
    if np128 >= 256:
        tn = min(tn, _round_up(pl.cdiv(np128, 2), 128))
    return tk, tn


def prepare_weight(weight, *, tk=2048, tn=1024):
    """One-time weight prep: bf16 cast + tile-grid zero padding.

    Done outside the per-call jitted forward so no padded copy of W is
    re-materialized in HBM on every call, and the streamed bytes are halved.
    Returns (padded bf16 weight, static config dict for eventvpr_forward).
    """
    n_out, n_in = weight.shape
    tk, tn = _pick_tiles(n_in, n_out, tk, tn)
    kp = pl.cdiv(n_in, tk) * tk
    npad = pl.cdiv(n_out, tn) * tn
    w = weight.astype(jnp.bfloat16)
    if (npad, kp) != (n_out, n_in):
        w = jnp.pad(w, ((0, npad - n_out), (0, kp - n_in)))
    return w, dict(n_out=n_out, tk=tk, tn=tn)


def eventvpr_kernel(x_ref, w_ref, o_ref, *, tk):
    """One (j, k) grid step.

    x_ref : (Bp, Kp)  whole flattened input, resident in VMEM (f32)
    w_ref : (tn, tk)  bf16 weight tile, streamed from HBM exactly once
    o_ref : (Bp, tn)  f32 output tile; doubles as the accumulator across K
    """
    k = pl.program_id(1)

    @pl.when(k == 0)
    def _():
        o_ref[...] = jnp.zeros_like(o_ref)

    # Slice the K chunk from the resident x block (128-aligned start) and cast
    # to bf16 right before the MXU so the x BlockSpec keeps its f32 tiling.
    x_chunk = x_ref[:, pl.ds(pl.multiple_of(k * tk, 128), tk)].astype(jnp.bfloat16)

    # A · Bᵀ: contract the last dim (K) of both operands — no weight transpose.
    o_ref[...] += jax.lax.dot_general(
        x_chunk,
        w_ref[...],
        dimension_numbers=(((1,), (1,)), ((), ())),
        preferred_element_type=jnp.float32,
    )

    @pl.when(k == pl.num_programs(1) - 1)
    def _():
        # LIF (single step from reset): v = h / tau; spike = (v >= v_th)
        #   <=> h >= tau * v_threshold.
        o_ref[...] = (o_ref[...] >= (TAU * V_THRESHOLD)).astype(o_ref.dtype)


@functools.partial(jax.jit, static_argnames=("n_out", "tk", "tn"))
def eventvpr_forward(x, w_padded, *, n_out, tk, tn):
    """x: (B, C, H, W) float32, w_padded: prepared bf16 weight -> (B, n_out) spikes."""
    B = x.shape[0]
    x_flat = x.reshape(B, -1).astype(jnp.float32)   # nn.Flatten(), row-major like PyTorch
    n_in = x_flat.shape[1]
    npad, kp = w_padded.shape

    # Pad batch to a sublane multiple (8) so output stores are unmasked, and
    # K to the (already chosen) tile grid. Zero padding is neutral for the matmul.
    Bp = _round_up(max(B, 8), 8)
    pad_rows = Bp - B
    pad_cols = kp - n_in
    if pad_rows or pad_cols:
        x_flat = jnp.pad(x_flat, ((0, pad_rows), (0, pad_cols)))

    grid = (npad // tn, kp // tk)
    n_w_tiles = grid[0] * grid[1]

    # Whole flattened x stays resident in VMEM across the grid (constant index
    # map -> DMA'd once); only Bp*Kp*4 bytes, a few MiB even for DVS-sized n_in.
    x_spec = pl.BlockSpec((Bp, kp), lambda j, k: (0, 0))

    # Weight stream is the only heavy HBM traffic; triple-buffer it when the
    # grid is long enough to cover the j-boundary step and DMA jitter.
    if n_w_tiles >= 3:
        w_spec = pl.BlockSpec((tn, tk), lambda j, k: (j, k),
                              pipeline_mode=pl.Buffered(3))
    else:
        w_spec = pl.BlockSpec((tn, tk), lambda j, k: (j, k))

    out = pl.pallas_call(
        functools.partial(eventvpr_kernel, tk=tk),
        out_shape=jax.ShapeDtypeStruct((Bp, npad), jnp.float32),
        grid_spec=pltpu.PrefetchScalarGridSpec(
            num_scalar_prefetch=0,
            grid=grid,
            in_specs=[x_spec, w_spec],
            out_specs=pl.BlockSpec((Bp, tn), lambda j, k: (0, j)),
        ),
        compiler_params=pltpu.CompilerParams(
            dimension_semantics=("parallel", "arbitrary"),
        ),
    )(x_flat, w_padded)

    return out[:B, :n_out]


def eventvpr_reference(x, weight):
    """Pure-JAX f32 reference for the same forward pass."""
    B = x.shape[0]
    h = x.reshape(B, -1).astype(jnp.float32) @ weight.astype(jnp.float32).T
    v = h / TAU
    return h, (v >= V_THRESHOLD).astype(jnp.float32)


if __name__ == "__main__":
    # Small shapes consistent with the module: input (B, C, H, W), n_in = C*H*W.
    B, C, H, W = 2, 4, 16, 16
    n_in = C * H * W          # 1024
    n_out = 128

    key = jax.random.PRNGKey(0)
    kx, kw = jax.random.split(key)
    x = jax.random.normal(kx, (B, C, H, W), dtype=jnp.float32)
    # Deterministic weight init (kaiming-uniform-like scale, as nn.Linear would use).
    bound = 1.0 / jnp.sqrt(jnp.float32(n_in))
    weight = jax.random.uniform(
        kw, (n_out, n_in), dtype=jnp.float32, minval=-bound, maxval=bound
    )

    # One-time weight prep (bf16 + tile padding), done outside the hot path.
    w_prepared, cfg = prepare_weight(weight)
    w_prepared = jax.block_until_ready(w_prepared)

    out = eventvpr_forward(x, w_prepared, **cfg)
    out = jax.block_until_ready(out)

    h_ref, spk_ref = eventvpr_reference(x, weight)
    assert out.shape == (B, n_out)

    # bf16 streaming of W (and the in-kernel bf16 cast of x) can only flip
    # spikes whose pre-activation is within bf16 rounding of the threshold;
    # mask those out of the exact comparison.
    near_threshold = jnp.abs(h_ref - TAU * V_THRESHOLD) < 2e-2
    assert bool(jnp.all((out == spk_ref) | near_threshold))
    # Spikes are strictly binary.
    assert bool(jnp.all((out == 0.0) | (out == 1.0)))

    print("KERNEL_OK")
</pallas_src>

<mosaic_0001>
module attributes {stable_mosaic.version = 11 : i64} {
  func.func @eventvpr_kernel(%arg0: i32, %arg1: i32, %arg2: memref<8x1024xf32, #tpu.memory_space<vmem>>, %arg3: memref<128x1024xbf16, #tpu.memory_space<vmem>>, %arg4: memref<8x128xf32, #tpu.memory_space<vmem>>) attributes {dimension_semantics = [#tpu.dimension_semantics<parallel>, #tpu.dimension_semantics<arbitrary>], iteration_bounds = array<i64: 1, 1>, scalar_prefetch = 0 : i64, scratch_operands = 0 : i64, tpu.core_type = #tpu.core_type<tc>, window_params = [{pipeline_mode = #tpu.pipeline_mode<synchronous>, transform_indices = @transform_0, window_bounds = array<i64: 8, 1024>}, {transform_indices = @transform_1, window_bounds = array<i64: 128, 1024>}, {transform_indices = @transform_2, window_bounds = array<i64: 8, 128>}]} {
    %c0_i32 = arith.constant 0 : i32
    %0 = arith.cmpi eq, %arg1, %c0_i32 : i32
    %1 = arith.extui %0 : i1 to i32
    %c0_i32_0 = arith.constant 0 : i32
    %2 = arith.cmpi ne, %1, %c0_i32_0 : i32
    scf.if %2 {
      %cst_9 = arith.constant 0.000000e+00 : f32
      %16 = vector.broadcast %cst_9 : f32 to vector<8x128xf32>
      %c0_10 = arith.constant 0 : index
      %c0_11 = arith.constant 0 : index
      %17 = vector.load %arg4[%c0_10, %c0_11] : memref<8x128xf32, #tpu.memory_space<vmem>>, vector<8x128xf32>
      tpu.vector_store %arg4[%c0_10, %c0_11], %16 {strides = array<i32>} : memref<8x128xf32, #tpu.memory_space<vmem>>, vector<8x128xf32>,
    } else {
    }
    %c1024_i32 = arith.constant 1024 : i32
    %3 = arith.muli %arg1, %c1024_i32 : i32
    %4 = tpu.assume_multiple %3, 128 : i32
    %c0 = arith.constant 0 : index
    %5 = arith.index_cast %4 : i32 to index
    %6 = vector.load %arg2[%c0, %5] : memref<8x1024xf32, #tpu.memory_space<vmem>>, vector<8x1024xf32>
    %7 = arith.truncf %6 : vector<8x1024xf32> to vector<8x1024xbf16>
    %c0_1 = arith.constant 0 : index
    %c0_2 = arith.constant 0 : index
    %8 = vector.load %arg4[%c0_1, %c0_2] : memref<8x128xf32, #tpu.memory_space<vmem>>, vector<8x128xf32>
    %c0_3 = arith.constant 0 : index
    %c0_4 = arith.constant 0 : index
    %9 = vector.load %arg3[%c0_3, %c0_4] : memref<128x1024xbf16, #tpu.memory_space<vmem>>, vector<128x1024xbf16>
    %cst = arith.constant dense<0.000000e+00> : vector<8x128xf32>
    %10 = tpu.matmul %7, %9, %cst {dimension_numbers = #tpu.dot_dimension_numbers<[1], [1], [0], [0], [0, 0, 1, 0], [], []>} : vector<8x1024xbf16>, vector<128x1024xbf16>, vector<8x128xf32> -> vector<8x128xf32>
    %11 = arith.addf %8, %10 : vector<8x128xf32>
    %c0_5 = arith.constant 0 : index
    %c0_6 = arith.constant 0 : index
    %12 = vector.load %arg4[%c0_5, %c0_6] : memref<8x128xf32, #tpu.memory_space<vmem>>, vector<8x128xf32>
    tpu.vector_store %arg4[%c0_5, %c0_6], %11 {strides = array<i32>} : memref<8x128xf32, #tpu.memory_space<vmem>>, vector<8x128xf32>,
    %c0_i32_7 = arith.constant 0 : i32
    %13 = arith.cmpi eq, %arg1, %c0_i32_7 : i32
    %14 = arith.extui %13 : i1 to i32
    %c0_i32_8 = arith.constant 0 : i32
    %15 = arith.cmpi ne, %14, %c0_i32_8 : i32
    scf.if %15 {
      %c0_9 = arith.constant 0 : index
      %c0_10 = arith.constant 0 : index
      %16 = vector.load %arg4[%c0_9, %c0_10] : memref<8x128xf32, #tpu.memory_space<vmem>>, vector<8x128xf32>
      %cst_11 = arith.constant 2.000000e+00 : f32
      %17 = vector.broadcast %cst_11 : f32 to vector<8x128xf32>
      %18 = arith.cmpf oge, %16, %17 : vector<8x128xf32>
      %19 = arith.extui %18 : vector<8x128xi1> to vector<8x128xi32>
      %20 = arith.sitofp %19 : vector<8x128xi32> to vector<8x128xf32>
      %c0_12 = arith.constant 0 : index
      %c0_13 = arith.constant 0 : index
      %21 = vector.load %arg4[%c0_12, %c0_13] : memref<8x128xf32, #tpu.memory_space<vmem>>, vector<8x128xf32>
      tpu.vector_store %arg4[%c0_12, %c0_13], %20 {strides = array<i32>} : memref<8x128xf32, #tpu.memory_space<vmem>>, vector<8x128xf32>,
    } else {
    }
    return
  }
  func.func @transform_0(%arg0: i32, %arg1: i32) -> (i32, i32) {
    %c0_i32 = arith.constant 0 : i32
    %c0_i32_0 = arith.constant 0 : i32
    %c0_i32_1 = arith.constant 0 : i32
    return %c0_i32, %c0_i32_0 : i32, i32
  }
  func.func @transform_1(%arg0: i32, %arg1: i32) -> (i32, i32) {
    %c0_i32 = arith.constant 0 : i32
    return %arg0, %arg1 : i32, i32
  }
  func.func @transform_2(%arg0: i32, %arg1: i32) -> (i32, i32) {
    %c0_i32 = arith.constant 0 : i32
    %c0_i32_0 = arith.constant 0 : i32
    return %c0_i32, %arg0 : i32, i32
  }
}

</mosaic_0001>

<bundles_post_ra>
// kernel: eventvpr_forward.1
= control target key start
LH: loop header
LB: loop body
LE: loop exit
PB: predicated region body
PF: predicated region fallthrough
CT: control target
= control target key end

     0   :  { %7 = vsyncpa [#allocation3], 0  ;;  %s910_s12 = smov [#allocation2]   ;;  %s911_s14 = smov 512   ;;  %s959_s0 = inlined_call_operand.vmem [shape: f32[8,1024], index: 0, kind: input, shape index: {}]   ;;  %s960_s1 = inlined_call_operand.hbm [shape: bf16[128,1024], index: 1, kind: input, shape index: {}]   ;;  %s961_s2 = inlined_call_operand.vmem [shape: f32[8,128], index: 2, kind: output, shape index: {}]  }
   0x1   :  { %s14_s11 = sshll.u32 %s960_s1, 4  ;;  %s16_s13 = sshll.u32 %s910_s12, 4  ;;  %s15_s11 = int_to_ptr.hbm [resolvable:$true] %s14_s11  ;;  %s17_s13 = int_to_ptr.vmem [resolvable:$true] %s16_s13 }
   0x2   :  { %s912_s15 = smov 32  }
   0x3   :  { %22 = dma.hbm_to_vmem [thread:$0]  %s15_s11, 8192, %s17_s13, [#allocation3], %s911_s14, %s911_s14, %s912_s15  }
   0x4   :  { %908 = dma.done.wait [#allocation3], 8192  }
   0x5   :  { %909 = vsyncadd [#allocation3], 4294959104  ;;  %v785_v0 = vld [vmem:[#allocation2 + $0x1c0] sm:$0xf]  ;;  %v872_v2 = vld [vmem:[#allocation2 + $0x1c4] sm:$0xf] }
   0x6   :  { %v876_v1 = vld [vmem:[#allocation2 + $0x1dc] sm:$0xf0]  ;;  %v787_v4 = vld [vmem:[#allocation2 + $0x1e0] sm:$0xf0]  ;;  %v793_v5 = vld [vmem:[#allocation2 + $0x1c8] sm:$0xf] }
   0x7   :  { %v786_v3 = vor.u32 %v876_v1, %v785_v0  ;;  %v877_v6 = vld [vmem:[#allocation2 + $0x1e4] sm:$0xf0]  ;;  %v790_v7 = vor.u32 %v872_v2, %v787_v4  ;;  %v873_v9 = vld [vmem:[#allocation2 + $0x1cc] sm:$0xf]  ;;  %v753_v12 = vld [vmem:[#allocation2 + $0x180] sm:$0xf] }
   0x8   :  { %v794_v8 = vor.u32 %v877_v6, %v793_v5  ;;  %v795_v10 = vld [vmem:[#allocation2 + $0x1e8] sm:$0xf0]  ;;  %v868_v13 = vld [vmem:[#allocation2 + $0x19c] sm:$0xf0]  ;;  %v864_v14 = vld [vmem:[#allocation2 + $0x184] sm:$0xf] }
   0x9   :  { %438 = vmatpush.bf16.xpose.msra.mxu0 %v786_v3  ;;  %v798_v11 = vor.u32 %v873_v9, %v795_v10  ;;  %451 = vmatpush.bf16.xpose.msra.mxu1 %v790_v7  ;;  %v755_v15 = vld [vmem:[#allocation2 + $0x1a0] sm:$0xf0]  ;;  %v761_v16 = vld [vmem:[#allocation2 + $0x188] sm:$0xf]  ;;  %v865_v18 = vld [vmem:[#allocation2 + $0x18c] sm:$0xf]  ;;  %v754_v20 = vor.u32 %v868_v13, %v753_v12 }
   0xa   :  { %464 = vmatpush.bf16.xpose.msra.mxu2 %v794_v8  ;;  %v869_v17 = vld [vmem:[#allocation2 + $0x1a4] sm:$0xf0]  ;;  %v763_v19 = vld [vmem:[#allocation2 + $0x1a8] sm:$0xf0]  ;;  %v758_v21 = vor.u32 %v864_v14, %v755_v15  ;;  %v721_v24 = vld [vmem:[#allocation2 + $0x140] sm:$0xf] }
   0xb   :  { %477 = vmatpush.bf16.xpose.msra.mxu3 %v798_v11  ;;  %v762_v22 = vor.u32 %v869_v17, %v761_v16  ;;  %v766_v23 = vor.u32 %v865_v18, %v763_v19  ;;  %v860_v25 = vld [vmem:[#allocation2 + $0x15c] sm:$0xf0]  ;;  %v856_v26 = vld [vmem:[#allocation2 + $0x144] sm:$0xf]  ;;  %v729_v28 = vld [vmem:[#allocation2 + $0x148] sm:$0xf] }
   0xc   :  { %v723_v27 = vld [vmem:[#allocation2 + $0x160] sm:$0xf0]  ;;  %v861_v29 = vld [vmem:[#allocation2 + $0x164] sm:$0xf0]  ;;  %v857_v30 = vld [vmem:[#allocation2 + $0x14c] sm:$0xf]  ;;  %v722_v32 = vor.u32 %v860_v25, %v721_v24 }
   0xd   :  { %v731_v31 = vld [vmem:[#allocation2 + $0x168] sm:$0xf0]  ;;  %v726_v33 = vor.u32 %v856_v26, %v723_v27  ;;  %v730_v34 = vor.u32 %v861_v29, %v729_v28  ;;  %v689_v36 = vld [vmem:[#allocation2 + $0x100] sm:$0xf]  ;;  %v848_v38 = vld [vmem:[#allocation2 + $0x104] sm:$0xf] }
   0xe   :  { %v734_v35 = vor.u32 %v857_v30, %v731_v31  ;;  %v852_v37 = vld [vmem:[#allocation2 + $0x11c] sm:$0xf0]  ;;  %v691_v39 = vld [vmem:[#allocation2 + $0x120] sm:$0xf0]  ;;  %v697_v40 = vld [vmem:[#allocation2 + $0x108] sm:$0xf] }
   0xf   :  { %v853_v41 = vld [vmem:[#allocation2 + $0x124] sm:$0xf0]  ;;  %v849_v42 = vld [vmem:[#allocation2 + $0x10c] sm:$0xf]  ;;  %v690_v44 = vor.u32 %v852_v37, %v689_v36  ;;  %v694_v45 = vor.u32 %v848_v38, %v691_v39  ;;  %v657_v48 = vld [vmem:[#allocation2 + $0xc0] sm:$0xf] }
  0x10   :  { %v699_v43 = vld [vmem:[#allocation2 + $0x128] sm:$0xf0]  ;;  %v698_v46 = vor.u32 %v853_v41, %v697_v40  ;;  %v844_v49 = vld [vmem:[#allocation2 + $0xdc] sm:$0xf0]  ;;  %v840_v50 = vld [vmem:[#allocation2 + $0xc4] sm:$0xf] }
  0x11   :  { %439 = vmatpush.bf16.xpose.msra.mxu0 %v754_v20  ;;  %452 = vmatpush.bf16.xpose.msra.mxu1 %v758_v21  ;;  %v702_v47 = vor.u32 %v849_v42, %v699_v43  ;;  %v659_v51 = vld [vmem:[#allocation2 + $0xe0] sm:$0xf0]  ;;  %v665_v52 = vld [vmem:[#allocation2 + $0xc8] sm:$0xf]  ;;  %v841_v54 = vld [vmem:[#allocation2 + $0xcc] sm:$0xf]  ;;  %v658_v56 = vor.u32 %v844_v49, %v657_v48 }
  0x12   :  { %465 = vmatpush.bf16.xpose.msra.mxu2 %v762_v22  ;;  %v845_v53 = vld [vmem:[#allocation2 + $0xe4] sm:$0xf0]  ;;  %v667_v55 = vld [vmem:[#allocation2 + $0xe8] sm:$0xf0]  ;;  %v662_v57 = vor.u32 %v840_v50, %v659_v51  ;;  %v625_v60 = vld [vmem:[#allocation2 + $0x80] sm:$0xf] }
  0x13   :  { %478 = vmatpush.bf16.xpose.msra.mxu3 %v766_v23  ;;  %v666_v58 = vor.u32 %v845_v53, %v665_v52  ;;  %v670_v59 = vor.u32 %v841_v54, %v667_v55  ;;  %v836_v61 = vld [vmem:[#allocation2 + $0x9c] sm:$0xf0]  ;;  %v832_v62 = vld [vmem:[#allocation2 + $0x84] sm:$0xf]  ;;  %v633_v0 = vld [vmem:[#allocation2 + $0x88] sm:$0xf] }
  0x14   :  { %v627_v63 = vld [vmem:[#allocation2 + $0xa0] sm:$0xf0]  ;;  %v837_v1 = vld [vmem:[#allocation2 + $0xa4] sm:$0xf0]  ;;  %v833_v2 = vld [vmem:[#allocation2 + $0x8c] sm:$0xf]  ;;  %v626_v4 = vor.u32 %v836_v61, %v625_v60 }
  0x15   :  { %v635_v3 = vld [vmem:[#allocation2 + $0xa8] sm:$0xf0]  ;;  %v630_v5 = vor.u32 %v832_v62, %v627_v63  ;;  %v634_v6 = vor.u32 %v837_v1, %v633_v0  ;;  %v593_v8 = vld [vmem:[#allocation2 + $0x40] sm:$0xf]  ;;  %v824_v10 = vld [vmem:[#allocation2 + $0x44] sm:$0xf] }
  0x16   :  { %v638_v7 = vor.u32 %v833_v2, %v635_v3  ;;  %v828_v9 = vld [vmem:[#allocation2 + $0x5c] sm:$0xf0]  ;;  %v595_v11 = vld [vmem:[#allocation2 + $0x60] sm:$0xf0]  ;;  %v601_v12 = vld [vmem:[#allocation2 + $0x48] sm:$0xf] }
  0x17   :  { %v829_v13 = vld [vmem:[#allocation2 + $0x64] sm:$0xf0]  ;;  %v825_v14 = vld [vmem:[#allocation2 + $0x4c] sm:$0xf]  ;;  %v594_v16 = vor.u32 %v828_v9, %v593_v8  ;;  %v598_v17 = vor.u32 %v824_v10, %v595_v11  ;;  %v561_v20 = vld [vmem:[#allocation2] sm:$0xf] }
  0x18   :  { %v603_v15 = vld [vmem:[#allocation2 + $0x68] sm:$0xf0]  ;;  %v602_v18 = vor.u32 %v829_v13, %v601_v12  ;;  %v820_v21 = vld [vmem:[#allocation2 + $0x1c] sm:$0xf0]  ;;  %v816_v22 = vld [vmem:[#allocation2 + $0x4] sm:$0xf] }
  0x19   :  { %440 = vmatpush.bf16.xpose.msra.mxu0 %v722_v32  ;;  %453 = vmatpush.bf16.xpose.msra.mxu1 %v726_v33  ;;  %v606_v19 = vor.u32 %v825_v14, %v603_v15  ;;  %v563_v23 = vld [vmem:[#allocation2 + $0x20] sm:$0xf0]  ;;  %v569_v24 = vld [vmem:[#allocation2 + $0x8] sm:$0xf]  ;;  %v817_v26 = vld [vmem:[#allocation2 + $0xc] sm:$0xf]  ;;  %v562_v31 = vor.u32 %v820_v21, %v561_v20 }
  0x1a   :  { %466 = vmatpush.bf16.xpose.msra.mxu2 %v730_v34  ;;  %v821_v25 = vld [vmem:[#allocation2 + $0x24] sm:$0xf0]  ;;  %v571_v27 = vld [vmem:[#allocation2 + $0x28] sm:$0xf0]  ;;  %v801_v28 = vld [vmem:[#allocation2 + $0x1d0] sm:$0xf] }
  0x1b   :  { %479 = vmatpush.bf16.xpose.msra.mxu3 %v734_v35  ;;  %v878_v29 = vld [vmem:[#allocation2 + $0x1ec] sm:$0xf0]  ;;  %v874_v30 = vld [vmem:[#allocation2 + $0x1d4] sm:$0xf]  ;;  %v809_v33 = vld [vmem:[#allocation2 + $0x1d8] sm:$0xf]  ;;  %v566_v35 = vor.u32 %v816_v22, %v563_v23  ;;  %v570_v36 = vor.u32 %v821_v25, %v569_v24  ;;  %v574_v39 = vor.u32 %v817_v26, %v571_v27 }
  0x1c   :  { %v803_v32 = vld [vmem:[#allocation2 + $0x1f0] sm:$0xf0]  ;;  %v879_v34 = vld [vmem:[#allocation2 + $0x1f4] sm:$0xf0]  ;;  %v875_v37 = vld [vmem:[#allocation2 + $0x1dc] sm:$0xf]  ;;  %v802_v40 = vor.u32 %v878_v29, %v801_v28 }
  0x1d   :  { %v811_v38 = vld [vmem:[#allocation2 + $0x1f8] sm:$0xf0]  ;;  %v806_v41 = vor.u32 %v874_v30, %v803_v32  ;;  %v810_v42 = vor.u32 %v879_v34, %v809_v33  ;;  %v777_v48 = vld [vmem:[#allocation2 + $0x198] sm:$0xf]  ;;  %v39_v50 = vld [vmem:[%s959_s0 + $0x10] sm:$0xff] }
  0x1e   :  { %v814_v43 = vor.u32 %v875_v37, %v811_v38  ;;  %v871_v49 = vld [vmem:[#allocation2 + $0x1b4] sm:$0xf0]  ;;  %v867_v51 = vld [vmem:[#allocation2 + $0x19c] sm:$0xf]  ;;  %v47_v53 = vpack.c.bf16 %v39_v50, %v39_v50  ;;  %v858_v60 = vld [vmem:[#allocation2 + $0x154] sm:$0xf] }
  0x1f   :  { %v779_v52 = vld [vmem:[#allocation2 + $0x1b8] sm:$0xf0]  ;;  %v739_v61 = vld [vmem:[#allocation2 + $0x170] sm:$0xf0]  ;;  %v37_v62 = vld [vmem:[%s959_s0] sm:$0xff] }
  0x20   :  { %v40_v63 = vld [vmem:[%s959_s0 + $0x18] sm:$0xff]  ;;  %v45_v2 = vpack.c.bf16 %v37_v62, %v37_v62  ;;  %v742_v9 = vor.u32 %v858_v60, %v739_v61  ;;  %v705_v12 = vld [vmem:[#allocation2 + $0x110] sm:$0xf]  ;;  %v850_v14 = vld [vmem:[#allocation2 + $0x114] sm:$0xf] }
  0x21   :  { %441 = vmatpush.bf16.xpose.msra.mxu0 %v690_v44  ;;  %454 = vmatpush.bf16.xpose.msra.mxu1 %v694_v45  ;;  %v769_v44 = vld [vmem:[#allocation2 + $0x190] sm:$0xf]  ;;  %v745_v0 = vld [vmem:[#allocation2 + $0x158] sm:$0xf]  ;;  %v48_v3 = vpack.c.bf16 %v40_v63, %v40_v63  ;;  %v707_v15 = vld [vmem:[#allocation2 + $0x130] sm:$0xf0] }
  0x22   :  { %467 = vmatpush.bf16.xpose.msra.mxu2 %v698_v46  ;;  %v870_v45 = vld [vmem:[#allocation2 + $0x1ac] sm:$0xf0]  ;;  %v866_v46 = vld [vmem:[#allocation2 + $0x194] sm:$0xf]  ;;  %v863_v1 = vld [vmem:[#allocation2 + $0x174] sm:$0xf0]  ;;  %v710_v21 = vor.u32 %v850_v14, %v707_v15 }
  0x23   :  { %480 = vmatpush.bf16.xpose.msra.mxu3 %v702_v47  ;;  %v771_v47 = vld [vmem:[#allocation2 + $0x1b0] sm:$0xf0]  ;;  %v770_v54 = vor.u32 %v870_v45, %v769_v44  ;;  %v746_v10 = vor.u32 %v863_v1, %v745_v0  ;;  %v854_v13 = vld [vmem:[#allocation2 + $0x12c] sm:$0xf0]  ;;  %v681_v28 = vld [vmem:[#allocation2 + $0xd8] sm:$0xf] }
  0x24   :  { %v774_v55 = vor.u32 %v866_v46, %v771_v47  ;;  %v706_v20 = vor.u32 %v854_v13, %v705_v12  ;;  %v673_v24 = vld [vmem:[#allocation2 + $0xd0] sm:$0xf]  ;;  %v842_v26 = vld [vmem:[#allocation2 + $0xd4] sm:$0xf]  ;;  %v847_v29 = vld [vmem:[#allocation2 + $0xf4] sm:$0xf0] }
  0x25   :  { %v846_v25 = vld [vmem:[#allocation2 + $0xec] sm:$0xf0]  ;;  %v675_v27 = vld [vmem:[#allocation2 + $0xf0] sm:$0xf0]  ;;  %v843_v30 = vld [vmem:[#allocation2 + $0xdc] sm:$0xf]  ;;  %v682_v34 = vor.u32 %v847_v29, %v681_v28 }
  0x26   :  { %v674_v32 = vor.u32 %v846_v25, %v673_v24  ;;  %v678_v33 = vor.u32 %v842_v26, %v675_v27  ;;  %v838_v37 = vld [vmem:[#allocation2 + $0xac] sm:$0xf0]  ;;  %v834_v38 = vld [vmem:[#allocation2 + $0x94] sm:$0xf]  ;;  %v585_v0 = vld [vmem:[#allocation2 + $0x18] sm:$0xf] }
  0x27   :  { %v826_v50 = vld [vmem:[#allocation2 + $0x54] sm:$0xf]  ;;  %v577_v60 = vld [vmem:[#allocation2 + $0x10] sm:$0xf]  ;;  %v823_v1 = vld [vmem:[#allocation2 + $0x34] sm:$0xf0] }
  0x28   :  { %v822_v61 = vld [vmem:[#allocation2 + $0x2c] sm:$0xf0]  ;;  %v818_v62 = vld [vmem:[#allocation2 + $0x14] sm:$0xf] }
  0x29   :  { %442 = vmatpush.bf16.xpose.msra.mxu0 %v658_v56  ;;  %455 = vmatpush.bf16.xpose.msra.mxu1 %v662_v57  ;;  %v778_v56 = vor.u32 %v871_v49, %v777_v48  ;;  %v782_v57 = vor.u32 %v867_v51, %v779_v52  ;;  %v609_v48 = vld [vmem:[#allocation2 + $0x50] sm:$0xf]  ;;  %v611_v51 = vld [vmem:[#allocation2 + $0x70] sm:$0xf0]  ;;  %v617_v52 = vld [vmem:[#allocation2 + $0x58] sm:$0xf] }
  0x2a   :  { %468 = vmatpush.bf16.xpose.msra.mxu2 %v666_v58  ;;  %v737_v58 = vld [vmem:[#allocation2 + $0x150] sm:$0xf]  ;;  %v579_v63 = vld [vmem:[#allocation2 + $0x30] sm:$0xf0] }
  0x2b   :  { %481 = vmatpush.bf16.xpose.msra.mxu3 %v670_v59  ;;  %v862_v59 = vld [vmem:[#allocation2 + $0x16c] sm:$0xf0] }
  0x2c   :  { %v738_v8 = vor.u32 %v862_v59, %v737_v58  ;;  %v830_v49 = vld [vmem:[#allocation2 + $0x6c] sm:$0xf0] }
  0x31   :  { %443 = vmatpush.bf16.xpose.msra.mxu0 %v626_v4  ;;  %456 = vmatpush.bf16.xpose.msra.mxu1 %v630_v5  ;;  %v38_v4 = vld [vmem:[%s959_s0 + $0x8] sm:$0xff]  ;;  %v859_v5 = vld [vmem:[#allocation2 + $0x15c] sm:$0xf] }
  0x32   :  { %469 = vmatpush.bf16.xpose.msra.mxu2 %v634_v6  ;;  %v747_v6 = vld [vmem:[#allocation2 + $0x178] sm:$0xf0] }
  0x33   :  { %482 = vmatpush.bf16.xpose.msra.mxu3 %v638_v7  ;;  %v46_v7 = vpack.c.bf16 %v38_v4, %v38_v4  ;;  %v750_v11 = vor.u32 %v859_v5, %v747_v6  ;;  %v578_v4 = vor.u32 %v822_v61, %v577_v60  ;;  %v582_v5 = vor.u32 %v818_v62, %v579_v63 }
  0x34   :  { %v586_v6 = vor.u32 %v823_v1, %v585_v0 }
  0x39   :  { %444 = vmatpush.bf16.xpose.msra.mxu0 %v594_v16  ;;  %457 = vmatpush.bf16.xpose.msra.mxu1 %v598_v17  ;;  %v713_v16 = vld [vmem:[#allocation2 + $0x118] sm:$0xf] }
  0x3a   :  { %470 = vmatpush.bf16.xpose.msra.mxu2 %v602_v18  ;;  %v855_v17 = vld [vmem:[#allocation2 + $0x134] sm:$0xf0]  ;;  %v851_v18 = vld [vmem:[#allocation2 + $0x11c] sm:$0xf] }
  0x3b   :  { %483 = vmatpush.bf16.xpose.msra.mxu3 %v606_v19  ;;  %v715_v19 = vld [vmem:[#allocation2 + $0x138] sm:$0xf0]  ;;  %v714_v22 = vor.u32 %v855_v17, %v713_v16 }
  0x3c   :  { %v718_v23 = vor.u32 %v851_v18, %v715_v19 }
  0x41   :  { %445 = vmatpush.bf16.xpose.msra.mxu0 %v562_v31  ;;  %458 = vmatpush.bf16.xpose.msra.mxu1 %v566_v35  ;;  %v683_v31 = vld [vmem:[#allocation2 + $0xf8] sm:$0xf0] }
  0x42   :  { %471 = vmatpush.bf16.xpose.msra.mxu2 %v570_v36  ;;  %v686_v35 = vor.u32 %v843_v30, %v683_v31  ;;  %v641_v36 = vld [vmem:[#allocation2 + $0x90] sm:$0xf] }
  0x43   :  { %484 = vmatpush.bf16.xpose.msra.mxu3 %v574_v39  ;;  %v643_v39 = vld [vmem:[#allocation2 + $0xb0] sm:$0xf0]  ;;  %v642_v44 = vor.u32 %v838_v37, %v641_v36  ;;  %v913_v37 = vmov 0.0  }
  0x44   :  { %v646_v45 = vor.u32 %v834_v38, %v643_v39 }
  0x48   :  { %446 = vmatmul.bf16.vlgmr.msra.gmra.mxu0 %v45_v2  ;;  %459 = vmatmul.bf16.vlgmr.msra.gmra.mxu1 %v46_v7  ;;  %v819_v2 = vld [vmem:[#allocation2 + $0x1c] sm:$0xf] }
  0x49   :  { %490 = vmatpush.bf16.xpose.msrb.mxu0 %v802_v40  ;;  %503 = vmatpush.bf16.xpose.msrb.mxu1 %v806_v41  ;;  %v649_v40 = vld [vmem:[#allocation2 + $0x98] sm:$0xf] }
  0x4a   :  { %516 = vmatpush.bf16.xpose.msrb.mxu2 %v810_v42  ;;  %485 = vmatmul.bf16.vlgmr.msra.gmra.mxu3 %v48_v3  ;;  %v839_v41 = vld [vmem:[#allocation2 + $0xb4] sm:$0xf0]  ;;  %v835_v42 = vld [vmem:[#allocation2 + $0x9c] sm:$0xf] }
  0x4b   :  { %529 = vmatpush.bf16.xpose.msrb.mxu3 %v814_v43  ;;  %472 = vmatmul.bf16.vlgmr.msra.gmra.mxu2 %v47_v53  ;;  %v651_v43 = vld [vmem:[#allocation2 + $0xb8] sm:$0xf0]  ;;  %v650_v46 = vor.u32 %v839_v41, %v649_v40  ;;  %v831_v53 = vld [vmem:[#allocation2 + $0x74] sm:$0xf0] }
  0x4c   :  { %v654_v47 = vor.u32 %v835_v42, %v651_v43  ;;  %v618_v58 = vor.u32 %v831_v53, %v617_v52  ;;  %v587_v3 = vld [vmem:[#allocation2 + $0x38] sm:$0xf0] }
  0x4d   :  { %v590_v7 = vor.u32 %v819_v2, %v587_v3 }
  0x51   :  { %491 = vmatpush.bf16.xpose.msrb.mxu0 %v770_v54  ;;  %504 = vmatpush.bf16.xpose.msrb.mxu1 %v774_v55  ;;  %v827_v54 = vld [vmem:[#allocation2 + $0x5c] sm:$0xf] }
  0x52   :  { %517 = vmatpush.bf16.xpose.msrb.mxu2 %v778_v56  ;;  %v619_v55 = vld [vmem:[#allocation2 + $0x78] sm:$0xf0]  ;;  %v610_v56 = vor.u32 %v830_v49, %v609_v48 }
  0x53   :  { %530 = vmatpush.bf16.xpose.msrb.mxu3 %v782_v57  ;;  %v614_v57 = vor.u32 %v826_v50, %v611_v51  ;;  %v622_v59 = vor.u32 %v827_v54, %v619_v55 }
  0x59   :  { %492 = vmatpush.bf16.xpose.msrb.mxu0 %v738_v8  ;;  %505 = vmatpush.bf16.xpose.msrb.mxu1 %v742_v9  ;;  %v41_v8 = vld [vmem:[%s959_s0 + $0x20] sm:$0xff]  ;;  %v42_v9 = vld [vmem:[%s959_s0 + $0x28] sm:$0xff] }
  0x5a   :  { %518 = vmatpush.bf16.xpose.msrb.mxu2 %v746_v10  ;;  %v43_v10 = vld [vmem:[%s959_s0 + $0x30] sm:$0xff]  ;;  %v49_v12 = vpack.c.bf16 %v41_v8, %v41_v8  ;;  %v50_v13 = vpack.c.bf16 %v42_v9, %v42_v9 }
  0x5b   :  { %531 = vmatpush.bf16.xpose.msrb.mxu3 %v750_v11  ;;  %v44_v11 = vld [vmem:[%s959_s0 + $0x38] sm:$0xff]  ;;  %v51_v14 = vpack.c.bf16 %v43_v10, %v43_v10 }
  0x5c   :  { %v52_v15 = vpack.c.bf16 %v44_v11, %v44_v11 }
  0x61   :  { %493 = vmatpush.bf16.xpose.msrb.mxu0 %v706_v20  ;;  %506 = vmatpush.bf16.xpose.msrb.mxu1 %v710_v21 }
  0x62   :  { %519 = vmatpush.bf16.xpose.msrb.mxu2 %v714_v22 }
  0x63   :  { %532 = vmatpush.bf16.xpose.msrb.mxu3 %v718_v23 }
  0x69   :  { %494 = vmatpush.bf16.xpose.msrb.mxu0 %v674_v32  ;;  %507 = vmatpush.bf16.xpose.msrb.mxu1 %v678_v33 }
  0x6a   :  { %520 = vmatpush.bf16.xpose.msrb.mxu2 %v682_v34 }
  0x6b   :  { %533 = vmatpush.bf16.xpose.msrb.mxu3 %v686_v35 }
  0x71   :  { %495 = vmatpush.bf16.xpose.msrb.mxu0 %v642_v44  ;;  %508 = vmatpush.bf16.xpose.msrb.mxu1 %v646_v45 }
  0x72   :  { %521 = vmatpush.bf16.xpose.msrb.mxu2 %v650_v46 }
  0x73   :  { %534 = vmatpush.bf16.xpose.msrb.mxu3 %v654_v47 }
  0x79   :  { %496 = vmatpush.bf16.xpose.msrb.mxu0 %v610_v56  ;;  %509 = vmatpush.bf16.xpose.msrb.mxu1 %v614_v57 }
  0x7a   :  { %522 = vmatpush.bf16.xpose.msrb.mxu2 %v618_v58 }
  0x7b   :  { %535 = vmatpush.bf16.xpose.msrb.mxu3 %v622_v59 }
  0x81   :  { %497 = vmatpush.bf16.xpose.msrb.mxu0 %v578_v4  ;;  %510 = vmatpush.bf16.xpose.msrb.mxu1 %v582_v5 }
  0x82   :  { %523 = vmatpush.bf16.xpose.msrb.mxu2 %v586_v6 }
  0x83   :  { %536 = vmatpush.bf16.xpose.msrb.mxu3 %v590_v7 }
  0x88   :  { %498 = vmatmul.bf16.vlgmr.msrb.gmra.mxu0 %v49_v12  ;;  %511 = vmatmul.bf16.vlgmr.msrb.gmra.mxu1 %v50_v13 }
  0x89   :  { %524 = vmatmul.bf16.vlgmr.msrb.gmra.mxu2 %v51_v14 }
  0x8a   :  { %537 = vmatmul.bf16.vlgmr.msrb.gmra.mxu3 %v52_v15 }
  0xc5   :  { %v447_v16 = vpop.f32.mrf.mxu0  ;;  %v460_v18 = vpop.f32.mrf.mxu1 }
  0xc6   :  { %v461_v24 = vadd.f32 %v460_v18, %v447_v16 }
  0xcd   :  { %v486_v19 = vpop.f32.mrf.mxu3  ;;  %v449_v20 = vpop.f32.mrf.mxu0 }
  0xce   :  { %v473_v17 = vpop.f32.mrf.mxu2  ;;  %v462_v22 = vpop.f32.mrf.mxu1 }
  0xcf   :  { %v474_v25 = vadd.f32 %v473_v17, %v461_v24 }
  0xd1   :  { %v487_v26 = vadd.f32 %v486_v19, %v474_v25 }
  0xd5   :  { %v488_v23 = vpop.f32.mrf.mxu3 }
  0xd6   :  { %v475_v21 = vpop.f32.mrf.mxu2 }
 0x105   :  { %v499_v27 = vpop.f32.mrf.mxu0  ;;  %v512_v28 = vpop.f32.mrf.mxu1 }
 0x106   :  { %v500_v29 = vadd.f32 %v499_v27, %v487_v26 }
 0x108   :  { %v513_v30 = vadd.f32 %v512_v28, %v500_v29 }
 0x10c   :  { %v525_v31 = vpop.f32.mrf.mxu2 }
 0x10d   :  { %v526_v32 = vadd.f32 %v525_v31, %v513_v30  ;;  %v538_v33 = vpop.f32.mrf.mxu3  ;;  %v501_v34 = vpop.f32.mrf.mxu0 }
 0x10e   :  { %v514_v35 = vpop.f32.mrf.mxu1 }
 0x10f   :  { %v539_v36 = vadd.f32 %v538_v33, %v526_v32 }
 0x111   :  { %vm548_vm0 = vcmp.ge.f32.partialorder %v539_v36, 2.0 }
 0x112   :  { %v815_v38 = vsel %vm548_vm0, 1.0, %v913_v37 }
 0x113   :  { %551 = vst [vmem:[%s961_s2] sm:$0xff] %v815_v38 }
 0x114   :  { %v527_v39 = vpop.f32.mrf.mxu2 }
 0x115   :  { %v540_v40 = vpop.f32.mrf.mxu3 }
 0x116   :  { %556 = vsyncpa [#allocation3], 1 }

</bundles_post_ra>
